<compile_context>
chip_gen: v7x
topology: tpu7x:2x2x1
jax: 0.10.0
libtpu: 0.0.40
codegen_flags: <defaults>
</compile_context>

<pallas_src>
import functools

import jax
import jax.numpy as jnp
import numpy as np
from jax.experimental import pallas as pl
from jax.experimental.pallas import tpu as pltpu


def _round_up(x, m):
    return (x + m - 1) // m * m


# ----------------------------------------------------------------------------
# Pallas kernel: complex 2-layer MLP + ReLU + softshrink + inverse k-DFT
# ----------------------------------------------------------------------------
def _mirm_kernel(xr_ref, xi_ref,
                 w1r_ref, w1i_ref, w1s_ref, b1r_ref, b1i_ref,
                 w2r_ref, w2i_ref, w2s_ref, b2r_ref, b2i_ref,
                 gir_ref, gii_ref, gis_ref,
                 yr_ref, yi_ref, *, lam):
    xr = xr_ref[...]          # (TM, E) f32
    xi = xi_ref[...]

    def cmatmul(ar, ai, wr_ref, wi_ref, ws_ref):
        # Gauss 3-mult complex matmul: (ar + i*ai) @ (wr + i*wi)
        #   t1 = ar@wr, t2 = ai@wi, t3 = (ar+ai)@(wr+wi)
        #   real = t1 - t2, imag = t3 - t1 - t2
        t1 = jnp.dot(ar, wr_ref[...], preferred_element_type=jnp.float32)
        t2 = jnp.dot(ai, wi_ref[...], preferred_element_type=jnp.float32)
        t3 = jnp.dot(ar + ai, ws_ref[...], preferred_element_type=jnp.float32)
        return t1 - t2, t3 - t1 - t2

    # Layer 1 (the forward k-point DFT is already folded into w1).
    h_r, h_i = cmatmul(xr, xi, w1r_ref, w1i_ref, w1s_ref)
    o1r = jax.nn.relu(h_r + b1r_ref[...])
    o1i = jax.nn.relu(h_i + b1i_ref[...])

    # Layer 2.
    g_r, g_i = cmatmul(o1r, o1i, w2r_ref, w2i_ref, w2s_ref)
    o2r = g_r + b2r_ref[...]
    o2i = g_i + b2i_ref[...]

    # Softshrink (F.softshrink with lambd = sparsity_threshold), kept in f32.
    def softshrink(v):
        return jnp.where(v > lam, v - lam, jnp.where(v < -lam, v + lam, 0.0))

    z_r = softshrink(o2r)
    z_i = softshrink(o2i)

    # Inverse k-point DFT (the axis=2 half of irfft2) as a complex matmul.
    y_r, y_i = cmatmul(z_r, z_i, gir_ref, gii_ref, gis_ref)
    yr_ref[...] = y_r
    yi_ref[...] = y_i


def _mirm_spectral_mlp(xr, xi, dense, lam, max_tile=512):
    """xr, xi: (M, E) float32.  Returns (yr, yi) of the same shape."""
    M, E = xr.shape

    # Derive the M-tile from a VMEM budget: 4 activation tiles (xr,xi,yr,yi),
    # double-buffered, f32; weights (resident, constant index_map) counted
    # twice for safety and subtracted first.  Fits v5e/v6e/v7x scoped VMEM.
    vmem_cap = 32 * 1024 * 1024
    weight_bytes = (9 * E * E + 4 * E) * 4
    act_budget = max(vmem_cap // 2 - 2 * weight_bytes, 1 << 20)
    tm_cap = act_budget // (4 * 2 * 4 * E)            # 4 tensors * 2 buf * 4 B
    tm_cap = max(8, min(max_tile, (tm_cap // 8) * 8))
    TM = min(tm_cap, _round_up(M, 8))
    M_pad = _round_up(M, TM)
    if M_pad != M:
        pad = ((0, M_pad - M), (0, 0))
        xr = jnp.pad(xr, pad)
        xi = jnp.pad(xi, pad)

    act_spec = pl.BlockSpec((TM, E), lambda m: (m, 0))
    w_spec = pl.BlockSpec((E, E), lambda m: (0, 0))    # constant -> resident
    b_spec = pl.BlockSpec((1, E), lambda m: (0, 0))

    kernel = functools.partial(_mirm_kernel, lam=lam)

    yr, yi = pl.pallas_call(
        kernel,
        grid=(M_pad // TM,),
        in_specs=[act_spec, act_spec,
                  w_spec, w_spec, w_spec, b_spec, b_spec,
                  w_spec, w_spec, w_spec, b_spec, b_spec,
                  w_spec, w_spec, w_spec],
        out_specs=[act_spec, act_spec],
        out_shape=[jax.ShapeDtypeStruct((M_pad, E), jnp.float32),
                   jax.ShapeDtypeStruct((M_pad, E), jnp.float32)],
        compiler_params=pltpu.CompilerParams(
            dimension_semantics=("parallel",),
            vmem_limit_bytes=vmem_cap),
    )(xr, xi,
      dense["w1r"], dense["w1i"], dense["w1s"], dense["b1r"], dense["b1i"],
      dense["w2r"], dense["w2i"], dense["w2s"], dense["b2r"], dense["b2i"],
      dense["gir"], dense["gii"], dense["gis"])

    if M_pad != M:
        yr = yr[:M]
        yi = yi[:M]
    return yr, yi


# ----------------------------------------------------------------------------
# Parameter preparation: block-diagonal weights + folded k-DFT matrices
# ----------------------------------------------------------------------------
def _block_diag(w):
    """w: (k, e, e) -> (k*e, k*e) block-diagonal (input index first)."""
    k, e, _ = w.shape
    eye_k = jnp.eye(k, dtype=w.dtype)
    return jnp.einsum("ab,aij->aibj", eye_k, w).reshape(k * e, k * e)


def _prepare_dense_params(params, k, e):
    w1, b1, w2, b2 = params["w1"], params["b1"], params["w2"], params["b2"]
    E = k * e
    hp = jax.lax.Precision.HIGHEST

    # k-point ortho DFT matrix and its inverse, lifted to the E axis via kron.
    idx = jnp.arange(k)
    F = (jnp.exp(-2j * jnp.pi * jnp.outer(idx, idx) / k)
         / np.sqrt(k)).astype(jnp.complex64)
    Finv = jnp.conj(F).T
    eye_e = jnp.eye(e, dtype=jnp.float32)
    G = jnp.kron(F.T, eye_e)          # y = x @ G  <=>  fft(ortho) along k
    Gi = jnp.kron(Finv.T, eye_e)      # y = z @ Gi <=> ifft(ortho) along k

    # Layer 1: fold the forward k-DFT into the block-diagonal weight.
    w1bd = _block_diag(w1[0]) + 1j * _block_diag(w1[1])
    w1p = jnp.matmul(G, w1bd, precision=hp)
    w1r = jnp.real(w1p)
    w1i = jnp.imag(w1p)

    # Layer 2: plain block-diagonal complex weight.
    w2r = _block_diag(w2[0])
    w2i = _block_diag(w2[1])

    gir = jnp.real(Gi)
    gii = jnp.imag(Gi)

    return {
        "w1r": w1r, "w1i": w1i, "w1s": w1r + w1i,
        "b1r": b1[0].reshape(1, E), "b1i": b1[1].reshape(1, E),
        "w2r": w2r, "w2i": w2i, "w2s": w2r + w2i,
        "b2r": b2[0].reshape(1, E), "b2i": b2[1].reshape(1, E),
        "gir": gir, "gii": gii, "gis": gir + gii,
    }


# ----------------------------------------------------------------------------
# MIRM forward (wrapper: 1-D FFT glue in plain JAX, hot path in Pallas)
# ----------------------------------------------------------------------------
def mirm_forward(x, params, *, lam, max_tile=512):
    bias = x
    dtype = x.dtype
    B, L, E = x.shape
    k = params["w1"].shape[1]
    e = E // k

    # Length-L real FFT in XLA; the k-point DFT is folded into the kernel.
    xf = jnp.fft.rfft(x.astype(jnp.float32).reshape(B, L, k, e),
                      axis=1, norm="ortho")            # (B, Lf, k, e) c64
    Lf = xf.shape[1]
    M = B * Lf

    xr = jnp.real(xf).reshape(M, E)                    # pure reshape
    xi = jnp.imag(xf).reshape(M, E)

    dense = _prepare_dense_params(params, k, e)
    yr, yi = _mirm_spectral_mlp(xr, xi, dense, lam, max_tile=max_tile)

    yc = (yr + 1j * yi).reshape(B, Lf, k, e)
    y = jnp.fft.irfft(yc, axis=1, norm="ortho")        # (B, L, k, e)
    y = y.reshape(B, L, E).astype(dtype)
    return y + bias


# ----------------------------------------------------------------------------
# Pure-JAX reference (mirrors the torch code) for correctness checking
# ----------------------------------------------------------------------------
def mirm_reference(x, params, lam):
    w1, b1, w2, b2 = params["w1"], params["b1"], params["w2"], params["b2"]
    bias = x
    dtype = x.dtype
    B, L, E = x.shape
    k = w1.shape[1]
    e = E // k

    xf = jnp.fft.rfft2(x.astype(jnp.float32).reshape(B, L, k, e),
                       axes=(2, 1), norm="ortho")
    hp = jax.lax.Precision.HIGHEST

    def ein(a, w):
        return jnp.einsum("...bi,bio->...bo", a, w, precision=hp)

    o1r = jax.nn.relu(ein(jnp.real(xf), w1[0]) - ein(jnp.imag(xf), w1[1]) + b1[0])
    o1i = jax.nn.relu(ein(jnp.imag(xf), w1[0]) + ein(jnp.real(xf), w1[1]) + b1[1])
    o2r = ein(o1r, w2[0]) - ein(o1i, w2[1]) + b2[0]
    o2i = ein(o1i, w2[0]) + ein(o1r, w2[1]) + b2[1]

    def softshrink(v):
        return jnp.where(v > lam, v - lam, jnp.where(v < -lam, v + lam, 0.0))

    yc = softshrink(o2r) + 1j * softshrink(o2i)
    y = jnp.fft.irfft2(yc, axes=(2, 1), norm="ortho").reshape(B, L, E)
    return y.astype(dtype) + bias


# ----------------------------------------------------------------------------
def init_params(key, hidden_size, num_channel, sparsity_threshold=0.01,
                scale=0.02):
    assert hidden_size % num_channel == 0
    k = num_channel
    e = hidden_size // k
    k1, k2, k3, k4 = jax.random.split(key, 4)
    params = {
        "w1": scale * jax.random.normal(k1, (2, k, e, e), jnp.float32),
        "b1": scale * jax.random.normal(k2, (2, k, e), jnp.float32),
        "w2": scale * jax.random.normal(k3, (2, k, e, e), jnp.float32),
        "b2": scale * jax.random.normal(k4, (2, k, e), jnp.float32),
    }
    return params, float(sparsity_threshold)


if __name__ == "__main__":
    key = jax.random.PRNGKey(0)
    kx, kp = jax.random.split(key)

    B, L = 2, 8                 # L even so irfft recovers the original length
    num_channel = 3
    hidden_size = 48            # divisible by num_channel -> e = 16, E = 48

    x = jax.random.normal(kx, (B, L, hidden_size), jnp.float32)
    params, lam = init_params(kp, hidden_size, num_channel)

    fwd = jax.jit(functools.partial(mirm_forward, lam=lam))
    out = jax.block_until_ready(fwd(x, params))

    ref = jax.block_until_ready(mirm_reference(x, params, lam))

    assert out.shape == (B, L, hidden_size)
    assert out.dtype == x.dtype
    assert np.all(np.isfinite(np.asarray(out)))
    np.testing.assert_allclose(np.asarray(out), np.asarray(ref),
                               atol=2e-3, rtol=2e-3)

    print("KERNEL_OK")
</pallas_src>

<mosaic_0001>
module attributes {stable_mosaic.version = 11 : i64} {
  func.func @_mirm_kernel(%arg0: i32, %arg1: memref<16x48xf32, #tpu.memory_space<vmem>>, %arg2: memref<16x48xf32, #tpu.memory_space<vmem>>, %arg3: memref<48x48xf32, #tpu.memory_space<vmem>>, %arg4: memref<48x48xf32, #tpu.memory_space<vmem>>, %arg5: memref<48x48xf32, #tpu.memory_space<vmem>>, %arg6: memref<1x48xf32, #tpu.memory_space<vmem>>, %arg7: memref<1x48xf32, #tpu.memory_space<vmem>>, %arg8: memref<48x48xf32, #tpu.memory_space<vmem>>, %arg9: memref<48x48xf32, #tpu.memory_space<vmem>>, %arg10: memref<48x48xf32, #tpu.memory_space<vmem>>, %arg11: memref<1x48xf32, #tpu.memory_space<vmem>>, %arg12: memref<1x48xf32, #tpu.memory_space<vmem>>, %arg13: memref<48x48xf32, #tpu.memory_space<vmem>>, %arg14: memref<48x48xf32, #tpu.memory_space<vmem>>, %arg15: memref<48x48xf32, #tpu.memory_space<vmem>>, %arg16: memref<16x48xf32, #tpu.memory_space<vmem>>, %arg17: memref<16x48xf32, #tpu.memory_space<vmem>>) attributes {dimension_semantics = [#tpu.dimension_semantics<parallel>], iteration_bounds = array<i64: 1>, scalar_prefetch = 0 : i64, scratch_operands = 0 : i64, tpu.core_type = #tpu.core_type<tc>, window_params = [{transform_indices = @transform_0, window_bounds = array<i64: 16, 48>}, {transform_indices = @transform_1, window_bounds = array<i64: 16, 48>}, {pipeline_mode = #tpu.pipeline_mode<synchronous>, transform_indices = @transform_2, window_bounds = array<i64: 48, 48>}, {pipeline_mode = #tpu.pipeline_mode<synchronous>, transform_indices = @transform_3, window_bounds = array<i64: 48, 48>}, {pipeline_mode = #tpu.pipeline_mode<synchronous>, transform_indices = @transform_4, window_bounds = array<i64: 48, 48>}, {pipeline_mode = #tpu.pipeline_mode<synchronous>, transform_indices = @transform_5, window_bounds = array<i64: 1, 48>}, {pipeline_mode = #tpu.pipeline_mode<synchronous>, transform_indices = @transform_6, window_bounds = array<i64: 1, 48>}, {pipeline_mode = #tpu.pipeline_mode<synchronous>, transform_indices = @transform_7, window_bounds = array<i64: 48, 48>}, {pipeline_mode = #tpu.pipeline_mode<synchronous>, transform_indices = @transform_8, window_bounds = array<i64: 48, 48>}, {pipeline_mode = #tpu.pipeline_mode<synchronous>, transform_indices = @transform_9, window_bounds = array<i64: 48, 48>}, {pipeline_mode = #tpu.pipeline_mode<synchronous>, transform_indices = @transform_10, window_bounds = array<i64: 1, 48>}, {pipeline_mode = #tpu.pipeline_mode<synchronous>, transform_indices = @transform_11, window_bounds = array<i64: 1, 48>}, {pipeline_mode = #tpu.pipeline_mode<synchronous>, transform_indices = @transform_12, window_bounds = array<i64: 48, 48>}, {pipeline_mode = #tpu.pipeline_mode<synchronous>, transform_indices = @transform_13, window_bounds = array<i64: 48, 48>}, {pipeline_mode = #tpu.pipeline_mode<synchronous>, transform_indices = @transform_14, window_bounds = array<i64: 48, 48>}, {transform_indices = @transform_15, window_bounds = array<i64: 16, 48>}, {transform_indices = @transform_16, window_bounds = array<i64: 16, 48>}]} {
    %c0 = arith.constant 0 : index
    %c0_0 = arith.constant 0 : index
    %0 = vector.load %arg1[%c0, %c0_0] : memref<16x48xf32, #tpu.memory_space<vmem>>, vector<16x48xf32>
    %c0_1 = arith.constant 0 : index
    %c0_2 = arith.constant 0 : index
    %1 = vector.load %arg2[%c0_1, %c0_2] : memref<16x48xf32, #tpu.memory_space<vmem>>, vector<16x48xf32>
    %c0_3 = arith.constant 0 : index
    %c0_4 = arith.constant 0 : index
    %2 = vector.load %arg3[%c0_3, %c0_4] : memref<48x48xf32, #tpu.memory_space<vmem>>, vector<48x48xf32>
    %cst = arith.constant dense<0.000000e+00> : vector<16x48xf32>
    %3 = tpu.matmul %0, %2, %cst {dimension_numbers = #tpu.dot_dimension_numbers<[1], [0], [0], [1], [0, 0, 1, 1], [], []>} : vector<16x48xf32>, vector<48x48xf32>, vector<16x48xf32> -> vector<16x48xf32>
    %c0_5 = arith.constant 0 : index
    %c0_6 = arith.constant 0 : index
    %4 = vector.load %arg4[%c0_5, %c0_6] : memref<48x48xf32, #tpu.memory_space<vmem>>, vector<48x48xf32>
    %cst_7 = arith.constant dense<0.000000e+00> : vector<16x48xf32>
    %5 = tpu.matmul %1, %4, %cst_7 {dimension_numbers = #tpu.dot_dimension_numbers<[1], [0], [0], [1], [0, 0, 1, 1], [], []>} : vector<16x48xf32>, vector<48x48xf32>, vector<16x48xf32> -> vector<16x48xf32>
    %6 = arith.addf %0, %1 : vector<16x48xf32>
    %c0_8 = arith.constant 0 : index
    %c0_9 = arith.constant 0 : index
    %7 = vector.load %arg5[%c0_8, %c0_9] : memref<48x48xf32, #tpu.memory_space<vmem>>, vector<48x48xf32>
    %cst_10 = arith.constant dense<0.000000e+00> : vector<16x48xf32>
    %8 = tpu.matmul %6, %7, %cst_10 {dimension_numbers = #tpu.dot_dimension_numbers<[1], [0], [0], [1], [0, 0, 1, 1], [], []>} : vector<16x48xf32>, vector<48x48xf32>, vector<16x48xf32> -> vector<16x48xf32>
    %9 = arith.subf %3, %5 : vector<16x48xf32>
    %10 = arith.subf %8, %3 : vector<16x48xf32>
    %11 = arith.subf %10, %5 : vector<16x48xf32>
    %c0_11 = arith.constant 0 : index
    %c0_12 = arith.constant 0 : index
    %12 = vector.load %arg6[%c0_11, %c0_12] : memref<1x48xf32, #tpu.memory_space<vmem>>, vector<1x48xf32>
    %13 = vector.broadcast %12 : vector<1x48xf32> to vector<16x48xf32>
    %14 = arith.addf %9, %13 : vector<16x48xf32>
    %cst_13 = arith.constant 0.000000e+00 : f32
    %15 = vector.broadcast %cst_13 : f32 to vector<16x48xf32>
    %16 = arith.maximumf %14, %15 : vector<16x48xf32>
    %c0_14 = arith.constant 0 : index
    %c0_15 = arith.constant 0 : index
    %17 = vector.load %arg7[%c0_14, %c0_15] : memref<1x48xf32, #tpu.memory_space<vmem>>, vector<1x48xf32>
    %18 = vector.broadcast %17 : vector<1x48xf32> to vector<16x48xf32>
    %19 = arith.addf %11, %18 : vector<16x48xf32>
    %cst_16 = arith.constant 0.000000e+00 : f32
    %20 = vector.broadcast %cst_16 : f32 to vector<16x48xf32>
    %21 = arith.maximumf %19, %20 : vector<16x48xf32>
    %c0_17 = arith.constant 0 : index
    %c0_18 = arith.constant 0 : index
    %22 = vector.load %arg8[%c0_17, %c0_18] : memref<48x48xf32, #tpu.memory_space<vmem>>, vector<48x48xf32>
    %cst_19 = arith.constant dense<0.000000e+00> : vector<16x48xf32>
    %23 = tpu.matmul %16, %22, %cst_19 {dimension_numbers = #tpu.dot_dimension_numbers<[1], [0], [0], [1], [0, 0, 1, 1], [], []>} : vector<16x48xf32>, vector<48x48xf32>, vector<16x48xf32> -> vector<16x48xf32>
    %c0_20 = arith.constant 0 : index
    %c0_21 = arith.constant 0 : index
    %24 = vector.load %arg9[%c0_20, %c0_21] : memref<48x48xf32, #tpu.memory_space<vmem>>, vector<48x48xf32>
    %cst_22 = arith.constant dense<0.000000e+00> : vector<16x48xf32>
    %25 = tpu.matmul %21, %24, %cst_22 {dimension_numbers = #tpu.dot_dimension_numbers<[1], [0], [0], [1], [0, 0, 1, 1], [], []>} : vector<16x48xf32>, vector<48x48xf32>, vector<16x48xf32> -> vector<16x48xf32>
    %26 = arith.addf %16, %21 : vector<16x48xf32>
    %c0_23 = arith.constant 0 : index
    %c0_24 = arith.constant 0 : index
    %27 = vector.load %arg10[%c0_23, %c0_24] : memref<48x48xf32, #tpu.memory_space<vmem>>, vector<48x48xf32>
    %cst_25 = arith.constant dense<0.000000e+00> : vector<16x48xf32>
    %28 = tpu.matmul %26, %27, %cst_25 {dimension_numbers = #tpu.dot_dimension_numbers<[1], [0], [0], [1], [0, 0, 1, 1], [], []>} : vector<16x48xf32>, vector<48x48xf32>, vector<16x48xf32> -> vector<16x48xf32>
    %29 = arith.subf %23, %25 : vector<16x48xf32>
    %30 = arith.subf %28, %23 : vector<16x48xf32>
    %31 = arith.subf %30, %25 : vector<16x48xf32>
    %c0_26 = arith.constant 0 : index
    %c0_27 = arith.constant 0 : index
    %32 = vector.load %arg11[%c0_26, %c0_27] : memref<1x48xf32, #tpu.memory_space<vmem>>, vector<1x48xf32>
    %33 = vector.broadcast %32 : vector<1x48xf32> to vector<16x48xf32>
    %34 = arith.addf %29, %33 : vector<16x48xf32>
    %c0_28 = arith.constant 0 : index
    %c0_29 = arith.constant 0 : index
    %35 = vector.load %arg12[%c0_28, %c0_29] : memref<1x48xf32, #tpu.memory_space<vmem>>, vector<1x48xf32>
    %36 = vector.broadcast %35 : vector<1x48xf32> to vector<16x48xf32>
    %37 = arith.addf %31, %36 : vector<16x48xf32>
    %cst_30 = arith.constant 0.00999999977 : f32
    %38 = vector.broadcast %cst_30 : f32 to vector<16x48xf32>
    %39 = arith.cmpf ogt, %34, %38 : vector<16x48xf32>
    %cst_31 = arith.constant 0.00999999977 : f32
    %40 = vector.broadcast %cst_31 : f32 to vector<16x48xf32>
    %41 = arith.subf %34, %40 : vector<16x48xf32>
    %cst_32 = arith.constant -0.00999999977 : f32
    %42 = vector.broadcast %cst_32 : f32 to vector<16x48xf32>
    %43 = arith.cmpf olt, %34, %42 : vector<16x48xf32>
    %cst_33 = arith.constant 0.00999999977 : f32
    %44 = vector.broadcast %cst_33 : f32 to vector<16x48xf32>
    %45 = arith.addf %34, %44 : vector<16x48xf32>
    %cst_34 = arith.constant 0.000000e+00 : f32
    %46 = vector.broadcast %cst_34 : f32 to vector<16x48xf32>
    %47 = arith.select %43, %45, %46 : vector<16x48xi1>, vector<16x48xf32>
    %48 = arith.select %39, %41, %47 : vector<16x48xi1>, vector<16x48xf32>
    %cst_35 = arith.constant 0.00999999977 : f32
    %49 = vector.broadcast %cst_35 : f32 to vector<16x48xf32>
    %50 = arith.cmpf ogt, %37, %49 : vector<16x48xf32>
    %cst_36 = arith.constant 0.00999999977 : f32
    %51 = vector.broadcast %cst_36 : f32 to vector<16x48xf32>
    %52 = arith.subf %37, %51 : vector<16x48xf32>
    %cst_37 = arith.constant -0.00999999977 : f32
    %53 = vector.broadcast %cst_37 : f32 to vector<16x48xf32>
    %54 = arith.cmpf olt, %37, %53 : vector<16x48xf32>
    %cst_38 = arith.constant 0.00999999977 : f32
    %55 = vector.broadcast %cst_38 : f32 to vector<16x48xf32>
    %56 = arith.addf %37, %55 : vector<16x48xf32>
    %cst_39 = arith.constant 0.000000e+00 : f32
    %57 = vector.broadcast %cst_39 : f32 to vector<16x48xf32>
    %58 = arith.select %54, %56, %57 : vector<16x48xi1>, vector<16x48xf32>
    %59 = arith.select %50, %52, %58 : vector<16x48xi1>, vector<16x48xf32>
    %c0_40 = arith.constant 0 : index
    %c0_41 = arith.constant 0 : index
    %60 = vector.load %arg13[%c0_40, %c0_41] : memref<48x48xf32, #tpu.memory_space<vmem>>, vector<48x48xf32>
    %cst_42 = arith.constant dense<0.000000e+00> : vector<16x48xf32>
    %61 = tpu.matmul %48, %60, %cst_42 {dimension_numbers = #tpu.dot_dimension_numbers<[1], [0], [0], [1], [0, 0, 1, 1], [], []>} : vector<16x48xf32>, vector<48x48xf32>, vector<16x48xf32> -> vector<16x48xf32>
    %c0_43 = arith.constant 0 : index
    %c0_44 = arith.constant 0 : index
    %62 = vector.load %arg14[%c0_43, %c0_44] : memref<48x48xf32, #tpu.memory_space<vmem>>, vector<48x48xf32>
    %cst_45 = arith.constant dense<0.000000e+00> : vector<16x48xf32>
    %63 = tpu.matmul %59, %62, %cst_45 {dimension_numbers = #tpu.dot_dimension_numbers<[1], [0], [0], [1], [0, 0, 1, 1], [], []>} : vector<16x48xf32>, vector<48x48xf32>, vector<16x48xf32> -> vector<16x48xf32>
    %64 = arith.addf %48, %59 : vector<16x48xf32>
    %c0_46 = arith.constant 0 : index
    %c0_47 = arith.constant 0 : index
    %65 = vector.load %arg15[%c0_46, %c0_47] : memref<48x48xf32, #tpu.memory_space<vmem>>, vector<48x48xf32>
    %cst_48 = arith.constant dense<0.000000e+00> : vector<16x48xf32>
    %66 = tpu.matmul %64, %65, %cst_48 {dimension_numbers = #tpu.dot_dimension_numbers<[1], [0], [0], [1], [0, 0, 1, 1], [], []>} : vector<16x48xf32>, vector<48x48xf32>, vector<16x48xf32> -> vector<16x48xf32>
    %67 = arith.subf %61, %63 : vector<16x48xf32>
    %68 = arith.subf %66, %61 : vector<16x48xf32>
    %69 = arith.subf %68, %63 : vector<16x48xf32>
    %c0_49 = arith.constant 0 : index
    %c0_50 = arith.constant 0 : index
    %70 = vector.load %arg16[%c0_49, %c0_50] : memref<16x48xf32, #tpu.memory_space<vmem>>, vector<16x48xf32>
    tpu.vector_store %arg16[%c0_49, %c0_50], %67 {strides = array<i32>} : memref<16x48xf32, #tpu.memory_space<vmem>>, vector<16x48xf32>,
    %c0_51 = arith.constant 0 : index
    %c0_52 = arith.constant 0 : index
    %71 = vector.load %arg17[%c0_51, %c0_52] : memref<16x48xf32, #tpu.memory_space<vmem>>, vector<16x48xf32>
    tpu.vector_store %arg17[%c0_51, %c0_52], %69 {strides = array<i32>} : memref<16x48xf32, #tpu.memory_space<vmem>>, vector<16x48xf32>,
    return
  }
  func.func @transform_0(%arg0: i32) -> (i32, i32) {
    %c0_i32 = arith.constant 0 : i32
    %c0_i32_0 = arith.constant 0 : i32
    return %arg0, %c0_i32 : i32, i32
  }
  func.func @transform_1(%arg0: i32) -> (i32, i32) {
    %c0_i32 = arith.constant 0 : i32
    %c0_i32_0 = arith.constant 0 : i32
    return %arg0, %c0_i32 : i32, i32
  }
  func.func @transform_2(%arg0: i32) -> (i32, i32) {
    %c0_i32 = arith.constant 0 : i32
    %c0_i32_0 = arith.constant 0 : i32
    %c0_i32_1 = arith.constant 0 : i32
    return %c0_i32, %c0_i32_0 : i32, i32
  }
  func.func @transform_3(%arg0: i32) -> (i32, i32) {
    %c0_i32 = arith.constant 0 : i32
    %c0_i32_0 = arith.constant 0 : i32
    %c0_i32_1 = arith.constant 0 : i32
    return %c0_i32, %c0_i32_0 : i32, i32
  }
  func.func @transform_4(%arg0: i32) -> (i32, i32) {
    %c0_i32 = arith.constant 0 : i32
    %c0_i32_0 = arith.constant 0 : i32
    %c0_i32_1 = arith.constant 0 : i32
    return %c0_i32, %c0_i32_0 : i32, i32
  }
  func.func @transform_5(%arg0: i32) -> (i32, i32) {
    %c0_i32 = arith.constant 0 : i32
    %c0_i32_0 = arith.constant 0 : i32
    %c0_i32_1 = arith.constant 0 : i32
    return %c0_i32, %c0_i32_0 : i32, i32
  }
  func.func @transform_6(%arg0: i32) -> (i32, i32) {
    %c0_i32 = arith.constant 0 : i32
    %c0_i32_0 = arith.constant 0 : i32
    %c0_i32_1 = arith.constant 0 : i32
    return %c0_i32, %c0_i32_0 : i32, i32
  }
  func.func @transform_7(%arg0: i32) -> (i32, i32) {
    %c0_i32 = arith.constant 0 : i32
    %c0_i32_0 = arith.constant 0 : i32
    %c0_i32_1 = arith.constant 0 : i32
    return %c0_i32, %c0_i32_0 : i32, i32
  }
  func.func @transform_8(%arg0: i32) -> (i32, i32) {
    %c0_i32 = arith.constant 0 : i32
    %c0_i32_0 = arith.constant 0 : i32
    %c0_i32_1 = arith.constant 0 : i32
    return %c0_i32, %c0_i32_0 : i32, i32
  }
  func.func @transform_9(%arg0: i32) -> (i32, i32) {
    %c0_i32 = arith.constant 0 : i32
    %c0_i32_0 = arith.constant 0 : i32
    %c0_i32_1 = arith.constant 0 : i32
    return %c0_i32, %c0_i32_0 : i32, i32
  }
  func.func @transform_10(%arg0: i32) -> (i32, i32) {
    %c0_i32 = arith.constant 0 : i32
    %c0_i32_0 = arith.constant 0 : i32
    %c0_i32_1 = arith.constant 0 : i32
    return %c0_i32, %c0_i32_0 : i32, i32
  }
  func.func @transform_11(%arg0: i32) -> (i32, i32) {
    %c0_i32 = arith.constant 0 : i32
    %c0_i32_0 = arith.constant 0 : i32
    %c0_i32_1 = arith.constant 0 : i32
    return %c0_i32, %c0_i32_0 : i32, i32
  }
  func.func @transform_12(%arg0: i32) -> (i32, i32) {
    %c0_i32 = arith.constant 0 : i32
    %c0_i32_0 = arith.constant 0 : i32
    %c0_i32_1 = arith.constant 0 : i32
    return %c0_i32, %c0_i32_0 : i32, i32
  }
  func.func @transform_13(%arg0: i32) -> (i32, i32) {
    %c0_i32 = arith.constant 0 : i32
    %c0_i32_0 = arith.constant 0 : i32
    %c0_i32_1 = arith.constant 0 : i32
    return %c0_i32, %c0_i32_0 : i32, i32
  }
  func.func @transform_14(%arg0: i32) -> (i32, i32) {
    %c0_i32 = arith.constant 0 : i32
    %c0_i32_0 = arith.constant 0 : i32
    %c0_i32_1 = arith.constant 0 : i32
    return %c0_i32, %c0_i32_0 : i32, i32
  }
  func.func @transform_15(%arg0: i32) -> (i32, i32) {
    %c0_i32 = arith.constant 0 : i32
    %c0_i32_0 = arith.constant 0 : i32
    return %arg0, %c0_i32 : i32, i32
  }
  func.func @transform_16(%arg0: i32) -> (i32, i32) {
    %c0_i32 = arith.constant 0 : i32
    %c0_i32_0 = arith.constant 0 : i32
    return %arg0, %c0_i32 : i32, i32
  }
}

</mosaic_0001>

<bundles_post_ra>
// kernel: squeeze.13
= control target key start
LH: loop header
LB: loop body
LE: loop exit
PB: predicated region body
PF: predicated region fallthrough
CT: control target
= control target key end

     0   :  { %vm7_vm0 = vcmask 130048   ;;  %s30_s8 = smov 16   ;;  %vm13_vm1 = vcmask 392448   ;;  %vm19_vm2 = vcmask 261248   ;;  %s47_s0 = inlined_call_operand.vmem [shape: f32[3,16], index: 0, kind: input, shape index: {}]   ;;  %s48_s1 = inlined_call_operand.vmem [shape: f32[1,48], index: 1, kind: output, shape index: {}]  }
   0x1   :  { %v4_v0 = vld [vmem:[%s47_s0] sm:$0xf]  ;;  %s29_s0 = smov 32  }
   0x2   :  { %5 = vst [vmem:[#allocation1] sm:$0xf] %v4_v0 }
   0x9   :  { %v10_v1 = vld [vmem:[#allocation1 + $0x2] sm:$0x1]   ;;  %v6_v2 = vld [vmem:[#allocation1] sm:$0x1]   ;;  %v16_v3 = vld [vmem:[#allocation1 + $0x1] sm:$0x1]  }
   0xa   :  { %11 = vrot.lane.b32.xlu0 %v10_v1, %s29_s0  ;;  %8 = vst.msk [vmem:[#allocation0] sm:$0x1] %vm7_vm0, %v6_v2  }
   0xe   :  { %17 = vrot.lane.b32.xlu0 %v16_v3, %s30_s8 }
  0x7c   :  { %v12_v4 = vpop.permute.xlu0 %11  }
  0x7d   :  { %14 = vst.msk [vmem:[#allocation0] sm:$0x1] %vm13_vm1, %v12_v4  }
  0x80   :  { %v18_v5 = vpop.permute.xlu0 %17  }
  0x81   :  { %20 = vst.msk [vmem:[#allocation0] sm:$0x1] %vm19_vm2, %v18_v5  }
  0x88   :  { %v24_v6 = vld [vmem:[#allocation0] sm:$0x1] }
  0x89   :  { %26 = vst [vmem:[%s48_s1] sm:$0x1] %v24_v6 }

// kernel: reverse.1
= control target key start
LH: loop header
LB: loop body
LE: loop exit
PB: predicated region body
PF: predicated region fallthrough
CT: control target
= control target key end

     0   :  { %v71_v6 = vld [vmem:[#allocation1 + $0x28] sm:$0xf]  ;;  %v81_v7 = vld [vmem:[#allocation1 + $0x20] sm:$0xf]  ;;  %v91_v8 = vld [vmem:[#allocation1 + $0x18] sm:$0xf]  ;;  %v128_v12 = vlaneseq  ;;  %s377_s0 = inlined_call_operand.vmem [shape: f32[2,3,16,3], index: 0, kind: input, shape index: {}]   ;;  %s378_s1 = inlined_call_operand.vmem [shape: f32[2,3,16,3], index: 1, kind: output, shape index: {}]  }
   0x1   :  { %v18_v0 = vld [vmem:[%s377_s0] sm:$0xf]  ;;  %v20_v1 = vld [vmem:[%s377_s0 + $0x4] sm:$0xf]  ;;  %v22_v2 = vld [vmem:[%s377_s0 + $0x8] sm:$0xf] }
   0x2   :  { %19 = vst [vmem:[#allocation1 + $0x4] sm:$0xf] %v18_v0  ;;  %21 = vst [vmem:[#allocation1 + $0xc] sm:$0xf] %v20_v1  ;;  %v24_v3 = vld [vmem:[%s377_s0 + $0xc] sm:$0xf] }
   0x3   :  { %23 = vst [vmem:[#allocation1 + $0x14] sm:$0xf] %v22_v2  ;;  %v26_v4 = vld [vmem:[%s377_s0 + $0x10] sm:$0xf]  ;;  %v28_v5 = vld [vmem:[%s377_s0 + $0x14] sm:$0xf] }
   0x4   :  { %25 = vst [vmem:[#allocation1 + $0x1c] sm:$0xf] %v24_v3  ;;  %27 = vst [vmem:[#allocation1 + $0x24] sm:$0xf] %v26_v4  ;;  %v101_v9 = vld [vmem:[#allocation1 + $0x10] sm:$0xf] }
   0x5   :  { %29 = vst [vmem:[#allocation1 + $0x2c] sm:$0xf] %v28_v5  ;;  %73 = vst [vmem:[#allocation0 + $0x50] sm:$0xf] %v71_v6  ;;  %v111_v10 = vld [vmem:[#allocation1 + $0x8] sm:$0xf] }
   0x6   :  { %83 = vst [vmem:[#allocation0 + $0x40] sm:$0xf] %v81_v7  ;;  %93 = vst [vmem:[#allocation0 + $0x30] sm:$0xf] %v91_v8  ;;  %v118_v11 = vld [vmem:[#allocation1] sm:$0xf] }
   0x7   :  { %103 = vst [vmem:[#allocation0 + $0x20] sm:$0xf] %v101_v9  ;;  %113 = vst [vmem:[#allocation0 + $0x10] sm:$0xf] %v111_v10  ;;  %v129_v13 = vshrl.u32 %v128_v12, 7 }
   0x8   :  { %119 = vst [vmem:[#allocation0] sm:$0xf] %v118_v11 }
   0x9   :  { %v106_v15 = vld [vmem:[#allocation1 + $0xc] sm:$0xf]  ;;  %v115_v16 = vld [vmem:[#allocation1 + $0x4] sm:$0xf]  ;;  %vm130_vm0 = vcmp.lt.s32.totalorder %v129_v13, 3 }
   0xa   :  { %v96_v14 = vld [vmem:[#allocation1 + $0x14] sm:$0xf]  ;;  %108 = vst [vmem:[#allocation0 + $0x18] sm:$0xf] %v106_v15  ;;  %117 = vst [vmem:[#allocation0 + $0x8] sm:$0xf] %v115_v16 }
   0xb   :  { %v76_v18 = vld [vmem:[#allocation1 + $0x24] sm:$0xf]  ;;  %v86_v19 = vld [vmem:[#allocation1 + $0x1c] sm:$0xf]  ;;  %98 = vst [vmem:[#allocation0 + $0x28] sm:$0xf] %v96_v14 }
   0xc   :  { %v66_v17 = vld [vmem:[#allocation1 + $0x2c] sm:$0xf]  ;;  %78 = vst [vmem:[#allocation0 + $0x48] sm:$0xf] %v76_v18  ;;  %88 = vst [vmem:[#allocation0 + $0x38] sm:$0xf] %v86_v19 }
   0xd   :  { %68 = vst [vmem:[#allocation0 + $0x58] sm:$0xf] %v66_v17  ;;  %v163_v20 = vld [vmem:[#allocation0 + $0x37] ss:$-1 sm:$0xff]  ;;  %v177_v21 = vld [vmem:[#allocation0 + $0x47] ss:$-1 sm:$0xff] }
   0xe   :  { %v191_v22 = vld [vmem:[#allocation0 + $0x57] ss:$-1 sm:$0xff]  ;;  %v149_v25 = vld [vmem:[#allocation0 + $0x27] ss:$-1 sm:$0xff]  ;;  %v164_v29 = vrot.slane %v163_v20, 5  ;;  %v178_v30 = vrot.slane %v177_v21, 5 }
   0xf   :  { %v121_v23 = vld [vmem:[#allocation0 + $0x7] ss:$-1 sm:$0xff]  ;;  %v135_v24 = vld [vmem:[#allocation0 + $0x17] ss:$-1 sm:$0xff]  ;;  %v150_v28 = vrot.slane %v149_v25, 5  ;;  %v192_v31 = vrot.slane %v191_v22, 5 }
  0x10   :  { %v122_v26 = vrot.slane %v121_v23, 5  ;;  %v136_v27 = vrot.slane %v135_v24, 5  ;;  %165 = vst [vmem:[#allocation2 + $0x18] sm:$0xff] %v164_v29  ;;  %179 = vst [vmem:[#allocation2 + $0x20] sm:$0xff] %v178_v30 }
  0x11   :  { %151 = vst [vmem:[#allocation2 + $0x10] sm:$0xff] %v150_v28  ;;  %193 = vst [vmem:[#allocation2 + $0x28] sm:$0xff] %v192_v31  ;;  %v126_v32 = vld [vmem:[#allocation0 + $0xf] ss:$-1 sm:$0xff]  ;;  %v140_v33 = vld [vmem:[#allocation0 + $0x1f] ss:$-1 sm:$0xff] }
  0x12   :  { %123 = vst [vmem:[#allocation2] sm:$0xff] %v122_v26  ;;  %137 = vst [vmem:[#allocation2 + $0x8] sm:$0xff] %v136_v27  ;;  %v154_v34 = vld [vmem:[#allocation0 + $0x2f] ss:$-1 sm:$0xff]  ;;  %v127_v35 = vrot.slane %v126_v32, 5  ;;  %v141_v36 = vrot.slane %v140_v33, 5 }
  0x13   :  { %v155_v37 = vrot.slane %v154_v34, 5  ;;  %v168_v38 = vld [vmem:[#allocation0 + $0x3f] ss:$-1 sm:$0xff]  ;;  %v182_v40 = vld [vmem:[#allocation0 + $0x4f] ss:$-1 sm:$0xff] }
  0x14   :  { %v169_v39 = vrot.slane %v168_v38, 5  ;;  %v196_v41 = vld [vmem:[#allocation0 + $0x5f] ss:$-1 sm:$0xff]  ;;  %131 = vst.msk [vmem:[#allocation2] sm:$0xff] %vm130_vm0, %v127_v35  ;;  %145 = vst.msk [vmem:[#allocation2 + $0x8] sm:$0xff] %vm130_vm0, %v141_v36  ;;  %v183_v42 = vrot.slane %v182_v40, 5 }
  0x15   :  { %159 = vst.msk [vmem:[#allocation2 + $0x10] sm:$0xff] %vm130_vm0, %v155_v37  ;;  %v197_v43 = vrot.slane %v196_v41, 5 }
  0x16   :  { %173 = vst.msk [vmem:[#allocation2 + $0x18] sm:$0xff] %vm130_vm0, %v169_v39  ;;  %187 = vst.msk [vmem:[#allocation2 + $0x20] sm:$0xff] %vm130_vm0, %v183_v42 }
  0x17   :  { %201 = vst.msk [vmem:[#allocation2 + $0x28] sm:$0xff] %vm130_vm0, %v197_v43 }
  0x1b   :  { %v205_v44 = vld [vmem:[#allocation2] sm:$0xf]  ;;  %v209_v45 = vld [vmem:[#allocation2 + $0x8] sm:$0xf] }
  0x1c   :  { %v214_v46 = vld [vmem:[#allocation2 + $0x10] sm:$0xf]  ;;  %207 = vst [vmem:[#allocation3] sm:$0xf] %v205_v44  ;;  %212 = vst [vmem:[#allocation3 + $0x4] sm:$0xf] %v209_v45 }
  0x1d   :  { %218 = vst [vmem:[#allocation3 + $0x8] sm:$0xf] %v214_v46  ;;  %v220_v47 = vld [vmem:[#allocation2 + $0x18] sm:$0xf]  ;;  %v226_v48 = vld [vmem:[#allocation2 + $0x20] sm:$0xf] }
  0x1e   :  { %224 = vst [vmem:[#allocation3 + $0xc] sm:$0xf] %v220_v47  ;;  %v232_v49 = vld [vmem:[#allocation2 + $0x28] sm:$0xf]  ;;  %230 = vst [vmem:[#allocation3 + $0x10] sm:$0xf] %v226_v48 }
  0x1f   :  { %236 = vst [vmem:[#allocation3 + $0x14] sm:$0xf] %v232_v49 }
  0x23   :  { %v252_v50 = vld [vmem:[#allocation3] sm:$0xff]  }
  0x24   :  { %253 = vst [vmem:[%s378_s1] sm:$0xff] %v252_v50  }
  0x25   :  { %v256_v51 = vld [vmem:[#allocation3 + $0x8] sm:$0xff]  }
  0x26   :  { %257 = vst [vmem:[%s378_s1 + $0x8] sm:$0xff] %v256_v51   ;;  %v260_v52 = vld [vmem:[#allocation3 + $0x10] sm:$0xff]  }
  0x27   :  { %261 = vst [vmem:[%s378_s1 + $0x10] sm:$0xff] %v260_v52  }

// kernel: mirm_forward.1
= control target key start
LH: loop header
LB: loop body
LE: loop exit
PB: predicated region body
PF: predicated region fallthrough
CT: control target
= control target key end

     0   :  { %vm62_vm0 = vcmask 392192   ;;  %s1586_s2 = inlined_call_operand.vmem [shape: f32[48,48], index: 2, kind: input, shape index: {}]   ;;  %s1587_s3 = inlined_call_operand.vmem [shape: f32[48,48], index: 3, kind: input, shape index: {}]   ;;  %s1588_s0 = inlined_call_operand.vmem [shape: f32[16,48], index: 0, kind: input, shape index: {}]   ;;  %s1589_s1 = inlined_call_operand.vmem [shape: f32[16,48], index: 1, kind: input, shape index: {}]   ;;  %s1590_s4 = inlined_call_operand.vmem [shape: f32[48,48], index: 4, kind: input, shape index: {}]   ;;  %s1591_s7 = inlined_call_operand.vmem [shape: f32[48,48], index: 7, kind: input, shape index: {}]   ;;  %s1592_s8 = inlined_call_operand.vmem [shape: f32[48,48], index: 8, kind: input, shape index: {}]   ;;  %s1593_s9 = inlined_call_operand.vmem [shape: f32[48,48], index: 9, kind: input, shape index: {}]   ;;  %s1594_s5 = inlined_call_operand.vmem [shape: f32[1,48], index: 5, kind: input, shape index: {}]   ;;  %s1595_s6 = inlined_call_operand.vmem [shape: f32[1,48], index: 6, kind: input, shape index: {}]   ;;  %s1596_s12 = inlined_call_operand.vmem [shape: f32[48,48], index: 12, kind: input, shape index: {}]   ;;  %s1597_s13 = inlined_call_operand.vmem [shape: f32[48,48], index: 13, kind: input, shape index: {}]   ;;  %s1598_s14 = inlined_call_operand.vmem [shape: f32[48,48], index: 14, kind: input, shape index: {}]   ;;  %s1599_s10 = inlined_call_operand.vmem [shape: f32[1,48], index: 10, kind: input, shape index: {}]   ;;  %s1600_s11 = inlined_call_operand.vmem [shape: f32[1,48], index: 11, kind: input, shape index: {}]   ;;  %s1601_s15 = inlined_call_operand.vmem [shape: f32[16,48], index: 15, kind: output, shape index: {0}]   ;;  %s1602_s16 = inlined_call_operand.vmem [shape: f32[16,48], index: 16, kind: output, shape index: {1}]  }
   0x1   :  { %1604 = sst [smem:[#allocation2_spill]] %s1586_s2  ;;  %v144_v2 = vld [vmem:[%s1587_s3] sm:$0xff]  ;;  %v145_v4 = vld [vmem:[%s1587_s3 + $0x8] sm:$0xff]  ;;  %v146_v9 = vld [vmem:[%s1587_s3 + $0x10] sm:$0xff] }
   0x2   :  { %s1605_s23 = sld [smem:[#allocation2_spill]]  ;;  %v1185_v7 = vpack.c.bf16 %v145_v4, %v144_v2  ;;  %v147_v10 = vld [vmem:[%s1587_s3 + $0x18] sm:$0xff]  ;;  %v148_v14 = vld [vmem:[%s1587_s3 + $0x20] sm:$0xff]  ;;  %v149_v15 = vld [vmem:[%s1587_s3 + $0x28] sm:$0xff] }
   0x3   :  { %v1189_v12 = vpack.c.bf16 %v147_v10, %v146_v9  ;;  %v52_v16 = vld [vmem:[%s1588_s0] sm:$0xff]  ;;  %v1193_v19 = vpack.c.bf16 %v149_v15, %v148_v14  ;;  %v234_v21 = vld [vmem:[%s1590_s4 + $0x8] sm:$0xff]  ;;  %v235_v25 = vld [vmem:[%s1590_s4 + $0x10] sm:$0xff] }
   0x4   :  { %1186 = vmatprep.subr.bf16.mxu1 %v1185_v7  ;;  %v54_v17 = vld [vmem:[%s1589_s1] sm:$0xff]  ;;  %1050 = vmatprep.mubr.msk.f32.mxu0 %vm62_vm0, %v52_v16  ;;  %v349_v23 = vld [vmem:[%s1591_s7 + $0x8] sm:$0xff]  ;;  %v236_v26 = vld [vmem:[%s1590_s4 + $0x18] sm:$0xff] }
   0x5   :  { %1188 = vmatpush3.bf16.msra.mxu1 %v1185_v7  ;;  %v233_v20 = vld [vmem:[%s1590_s4] sm:$0xff]  ;;  %1065 = vmatprep.mubr.msk.f32.mxu1 %vm62_vm0, %v54_v17  ;;  %v53_v28 = vld [vmem:[%s1588_s0 + $0x8] sm:$0xff]  ;;  %v231_v30 = vadd.f32 %v54_v17, %v52_v16  ;;  %v1201_v31 = vpack.c.bf16 %v236_v26, %v235_v25  ;;  %v350_v36 = vld [vmem:[%s1591_s7 + $0x10] sm:$0xff] }
   0x6   :  { %1190 = vmatprep.subr.bf16.mxu1 %v1189_v12  ;;  %v348_v22 = vld [vmem:[%s1591_s7] sm:$0xff]  ;;  %v1197_v24 = vpack.c.bf16 %v234_v21, %v233_v20  ;;  %v55_v29 = vld [vmem:[%s1589_s1 + $0x8] sm:$0xff]  ;;  %v351_v37 = vld [vmem:[%s1591_s7 + $0x18] sm:$0xff] }
   0x7   :  { %v1209_v27 = vpack.c.bf16 %v349_v23, %v348_v22  ;;  %v237_v32 = vld [vmem:[%s1590_s4 + $0x20] sm:$0xff]  ;;  %v238_v33 = vld [vmem:[%s1590_s4 + $0x28] sm:$0xff]  ;;  %v232_v35 = vadd.f32 %v55_v29, %v53_v28  ;;  %v1213_v38 = vpack.c.bf16 %v351_v37, %v350_v36  ;;  %v437_v48 = vld [vmem:[%s1592_s8 + $0x10] sm:$0xff] }
   0x8   :  { %v56_v0 = vld [vmem:[%s1605_s23] sm:$0xff]  ;;  %v57_v1 = vld [vmem:[%s1605_s23 + $0x8] sm:$0xff]  ;;  %v58_v5 = vld [vmem:[%s1605_s23 + $0x10] sm:$0xff]  ;;  %v1205_v34 = vpack.c.bf16 %v238_v33, %v237_v32 }
   0x9   :  { %v1173_v3 = vpack.c.bf16 %v57_v1, %v56_v0  ;;  %v59_v6 = vld [vmem:[%s1605_s23 + $0x18] sm:$0xff]  ;;  %v60_v11 = vld [vmem:[%s1605_s23 + $0x20] sm:$0xff]  ;;  %v61_v13 = vld [vmem:[%s1605_s23 + $0x28] sm:$0xff]  ;;  %1192 = vmatpush3.bf16.msra.mxu1 %v1189_v12 }
   0xa   :  { %v1177_v8 = vpack.c.bf16 %v59_v6, %v58_v5  ;;  %v1181_v18 = vpack.c.bf16 %v61_v13, %v60_v11  ;;  %1194 = vmatprep.subr.bf16.mxu1 %v1193_v19  ;;  %v352_v39 = vld [vmem:[%s1591_s7 + $0x20] sm:$0xff]  ;;  %v353_v40 = vld [vmem:[%s1591_s7 + $0x28] sm:$0xff]  ;;  %v438_v49 = vld [vmem:[%s1592_s8 + $0x18] sm:$0xff] }
   0xb   :  { %1174 = vmatprep.subr.bf16.mxu0 %v1173_v3  ;;  %v1217_v41 = vpack.c.bf16 %v353_v40, %v352_v39  ;;  %v435_v42 = vld [vmem:[%s1592_s8] sm:$0xff]  ;;  %v436_v43 = vld [vmem:[%s1592_s8 + $0x8] sm:$0xff]  ;;  %v1225_v50 = vpack.c.bf16 %v438_v49, %v437_v48  ;;  %v526_v63 = vld [vmem:[%s1593_s9 + $0x10] sm:$0xff] }
   0xc   :  { %1176 = vmatpush3.bf16.msra.mxu0 %v1173_v3  ;;  %v1221_v44 = vpack.c.bf16 %v436_v43, %v435_v42  ;;  %v524_v45 = vld [vmem:[%s1593_s9] sm:$0xff]  ;;  %v525_v46 = vld [vmem:[%s1593_s9 + $0x8] sm:$0xff]  ;;  %v527_v0 = vld [vmem:[%s1593_s9 + $0x18] sm:$0xff] }
   0xd   :  { %1178 = vmatprep.subr.bf16.mxu0 %v1177_v8  ;;  %1196 = vmatpush3.bf16.msra.mxu1 %v1193_v19  ;;  %v1233_v47 = vpack.c.bf16 %v525_v46, %v524_v45  ;;  %v439_v51 = vld [vmem:[%s1592_s8 + $0x20] sm:$0xff]  ;;  %v440_v52 = vld [vmem:[%s1592_s8 + $0x28] sm:$0xff]  ;;  %v1237_v3 = vpack.c.bf16 %v527_v0, %v526_v63  ;;  %v661_v23 = vld [vmem:[%s1596_s12 + $0x10] sm:$0xff] }
   0xe   :  { %1210 = vmatprep.subr.bf16.mxu1 %v1209_v27  ;;  %v1229_v53 = vpack.c.bf16 %v440_v52, %v439_v51  ;;  %v946_v56 = vld [vmem:[%s1594_s5] ss:$0 sm:$0xff]  ;;  %v529_v5 = vld [vmem:[%s1593_s9 + $0x28] sm:$0xff]  ;;  %v748_v32 = vld [vmem:[%s1597_s13 + $0x10] sm:$0xff] }
   0xf   :  { %v528_v4 = vld [vmem:[%s1593_s9 + $0x20] sm:$0xff]  ;;  %v660_v21 = vld [vmem:[%s1596_s12 + $0x8] sm:$0xff]  ;;  %v749_v33 = vld [vmem:[%s1597_s13 + $0x18] sm:$0xff] }
  0x10   :  { %1180 = vmatpush3.bf16.msra.mxu0 %v1177_v8  ;;  %1066 = vmatmul.mubr.msk.f32.vlgmr.msra.gmra.mrb[0].mxu1 %vm62_vm0, %v55_v29  ;;  %v1241_v7 = vpack.c.bf16 %v529_v5, %v528_v4  ;;  %v947_v10 = vld [vmem:[%s1595_s6] ss:$0 sm:$0xff]  ;;  %v836_v36 = vld [vmem:[%s1598_s14 + $0x8] sm:$0xff] }
  0x11   :  { %1182 = vmatprep.subr.bf16.mxu0 %v1181_v18  ;;  %1212 = vmatpush3.bf16.msra.mxu1 %v1209_v27  ;;  %v659_v20 = vld [vmem:[%s1596_s12] sm:$0xff]  ;;  %v747_v27 = vld [vmem:[%s1597_s13 + $0x8] sm:$0xff] }
  0x12   :  { %1214 = vmatprep.subr.bf16.mxu1 %v1213_v38  ;;  %v1245_v22 = vpack.c.bf16 %v660_v21, %v659_v20  ;;  %v746_v26 = vld [vmem:[%s1597_s13] sm:$0xff]  ;;  %v751_v39 = vld [vmem:[%s1597_s13 + $0x28] sm:$0xff] }
  0x13   :  { %v663_v29 = vld [vmem:[%s1596_s12 + $0x20] sm:$0xff]  ;;  %v840_v5 = vld [vmem:[%s1598_s14 + $0x28] sm:$0xff] }
  0x14   :  { %1184 = vmatpush3.bf16.msra.mxu0 %v1181_v18  ;;  %v839_v4 = vld [vmem:[%s1598_s14 + $0x20] sm:$0xff] }
  0x15   :  { %1198 = vmatprep.subr.bf16.mxu0 %v1197_v24  ;;  %1216 = vmatpush3.bf16.msra.mxu1 %v1213_v38  ;;  %v750_v38 = vld [vmem:[%s1597_s13 + $0x20] sm:$0xff] }
  0x16   :  { %1218 = vmatprep.subr.bf16.mxu1 %v1217_v41  ;;  %v1265_v40 = vpack.c.bf16 %v751_v39, %v750_v38 }
  0x17   :  { %1051 = vmatmul.mubr.msk.f32.vlgmr.msra.gmra.mrb[0].mxu0 %vm62_vm0, %v53_v28  ;;  %v1257_v28 = vpack.c.bf16 %v747_v27, %v746_v26 }
  0x18   :  { %1200 = vmatpush3.bf16.msra.mxu0 %v1197_v24  ;;  %1080 = vmatprep.mubr.msk.f32.mxu0 %vm62_vm0, %v231_v30  ;;  %v662_v24 = vld [vmem:[%s1596_s12 + $0x18] sm:$0xff]  ;;  %v664_v30 = vld [vmem:[%s1596_s12 + $0x28] sm:$0xff] }
  0x19   :  { %1202 = vmatprep.subr.bf16.mxu0 %v1201_v31  ;;  %1220 = vmatpush3.bf16.msra.mxu1 %v1217_v41  ;;  %v1249_v25 = vpack.c.bf16 %v662_v24, %v661_v23 }
  0x1a   :  { %1234 = vmatprep.subr.bf16.mxu1 %v1233_v47 }
  0x1c   :  { %1204 = vmatpush3.bf16.msra.mxu0 %v1201_v31  ;;  %v1253_v31 = vpack.c.bf16 %v664_v30, %v663_v29 }
  0x1d   :  { %1206 = vmatprep.subr.bf16.mxu0 %v1205_v34 }
  0x20   :  { %1208 = vmatpush3.bf16.msra.mxu0 %v1205_v34  ;;  %v1261_v34 = vpack.c.bf16 %v749_v33, %v748_v32 }
  0x21   :  { %1222 = vmatprep.subr.bf16.mxu0 %v1221_v44 }
  0x23   :  { %1081 = vmatmul.mubr.msk.f32.vlgmr.msra.gmra.mrb[2].mxu0 %vm62_vm0, %v232_v35  ;;  %v835_v35 = vld [vmem:[%s1598_s14] sm:$0xff] }
  0x24   :  { %1224 = vmatpush3.bf16.msra.mxu0 %v1221_v44  ;;  %v1269_v37 = vpack.c.bf16 %v836_v36, %v835_v35  ;;  %v954_v44 = vld [vmem:[%s1599_s10] ss:$0 sm:$0xff] }
  0x25   :  { %1226 = vmatprep.subr.bf16.mxu0 %v1225_v50 }
  0x28   :  { %1228 = vmatpush3.bf16.msra.mxu0 %v1225_v50 }
  0x29   :  { %1230 = vmatprep.subr.bf16.mxu0 %v1229_v53 }
  0x2c   :  { %1232 = vmatpush3.bf16.msra.mxu0 %v1229_v53  ;;  %v955_v53 = vld [vmem:[%s1600_s11] ss:$0 sm:$0xff] }
  0x2d   :  { %1246 = vmatprep.subr.bf16.mxu0 %v1245_v22 }
  0xe3   :  { %v1067_v55 = vpop.f32.mrb[0].mxu1 }
  0xe4   :  { %v222_v59 = vpop.f32.mrb[1].mxu1 }
  0xea   :  { %v1052_v54 = vpop.f32.mrb[0].mxu0 }
  0xeb   :  { %v135_v57 = vpop.f32.mrb[1].mxu0  ;;  %v321_v58 = vsub.f32 %v1052_v54, %v1067_v55 }
  0xec   :  { %v320_v60 = vsub.f32 %v135_v57, %v222_v59 }
  0xed   :  { %v334_v61 = vadd.f32 %v946_v56, %v321_v58 }
  0xee   :  { %v333_v62 = vadd.f32 %v946_v56, %v320_v60  ;;  %v837_v56 = vld [vmem:[%s1598_s14 + $0x10] sm:$0xff] }
  0xef   :  { %v336_v1 = vmax.f32 %v334_v61, 0.0 }
  0xf0   :  { %v335_v2 = vmax.f32 %v333_v62, 0.0 }
  0xf2   :  { %1095 = vmatprep.mubr.msk.f32.mxu1 %vm62_vm0, %v335_v2 }
  0xf3   :  { %1096 = vmatmul.mubr.msk.f32.vlgmr.msra.gmra.mrb[2].mxu1 %vm62_vm0, %v336_v1 }
  0xf4   :  { %1236 = vmatpush3.bf16.msra.mxu1 %v1233_v47 }
  0xf5   :  { %1238 = vmatprep.subr.bf16.mxu1 %v1237_v3 }
  0xf6   :  { %v1082_v6 = vpop.f32.mrb[2].mxu0 }
  0xf7   :  { %v323_v8 = vsub.f32 %v1082_v6, %v1052_v54  ;;  %v311_v9 = vpop.f32.mrb[3].mxu0 }
  0xf8   :  { %v322_v11 = vsub.f32 %v311_v9, %v135_v57  ;;  %1240 = vmatpush3.bf16.msra.mxu1 %v1237_v3  ;;  %v838_v57 = vld [vmem:[%s1598_s14 + $0x18] sm:$0xff] }
  0xf9   :  { %v325_v12 = vsub.f32 %v323_v8, %v1067_v55  ;;  %1242 = vmatprep.subr.bf16.mxu1 %v1241_v7  ;;  %v1273_v3 = vpack.c.bf16 %v838_v57, %v837_v56 }
  0xfa   :  { %v324_v13 = vsub.f32 %v322_v11, %v222_v59 }
  0xfb   :  { %v345_v14 = vadd.f32 %v947_v10, %v325_v12 }
  0xfc   :  { %v344_v15 = vadd.f32 %v947_v10, %v324_v13  ;;  %1244 = vmatpush3.bf16.msra.mxu1 %v1241_v7 }
  0xfd   :  { %v347_v16 = vmax.f32 %v345_v14, 0.0  ;;  %1258 = vmatprep.subr.bf16.mxu1 %v1257_v28 }
  0xfe   :  { %v346_v17 = vmax.f32 %v344_v15, 0.0  ;;  %v1277_v15 = vpack.c.bf16 %v840_v5, %v839_v4 }
  0xff   :  { %v523_v18 = vadd.f32 %v347_v16, %v336_v1 }
 0x100   :  { %v522_v19 = vadd.f32 %v346_v17, %v335_v2  ;;  %1110 = vmatprep.mubr.msk.f32.mxu0 %vm62_vm0, %v346_v17 }
 0x101   :  { %1111 = vmatmul.mubr.msk.f32.vlgmr.msra.gmra.mrb[4].mxu0 %vm62_vm0, %v347_v16 }
 0x102   :  { %1125 = vmatprep.mubr.msk.f32.mxu1 %vm62_vm0, %v522_v19  ;;  %1248 = vmatpush3.bf16.msra.mxu0 %v1245_v22 }
 0x103   :  { %1126 = vmatmul.mubr.msk.f32.vlgmr.msra.gmra.mrb[4].mxu1 %vm62_vm0, %v523_v18  ;;  %1250 = vmatprep.subr.bf16.mxu0 %v1249_v25 }
 0x104   :  { %1260 = vmatpush3.bf16.msra.mxu1 %v1257_v28 }
 0x105   :  { %1262 = vmatprep.subr.bf16.mxu1 %v1261_v34 }
 0x106   :  { %1252 = vmatpush3.bf16.msra.mxu0 %v1249_v25 }
 0x107   :  { %1254 = vmatprep.subr.bf16.mxu0 %v1253_v31 }
 0x108   :  { %1264 = vmatpush3.bf16.msra.mxu1 %v1261_v34 }
 0x109   :  { %1266 = vmatprep.subr.bf16.mxu1 %v1265_v40 }
 0x10a   :  { %1256 = vmatpush3.bf16.msra.mxu0 %v1253_v31 }
 0x10b   :  { %1270 = vmatprep.subr.bf16.mxu0 %v1269_v37 }
 0x10c   :  { %1268 = vmatpush3.bf16.msra.mxu1 %v1265_v40 }
 0x1c6   :  { %v1097_v41 = vpop.f32.mrb[2].mxu1 }
 0x1c7   :  { %v426_v42 = vpop.f32.mrb[3].mxu1 }
 0x1d4   :  { %v1112_v43 = vpop.f32.mrb[4].mxu0 }
 0x1d5   :  { %v612_v45 = vsub.f32 %v1097_v41, %v1112_v43  ;;  %v513_v46 = vpop.f32.mrb[5].mxu0 }
 0x1d6   :  { %v611_v47 = vsub.f32 %v426_v42, %v513_v46  ;;  %v1127_v48 = vpop.f32.mrb[4].mxu1 }
 0x1d7   :  { %v625_v49 = vadd.f32 %v954_v44, %v612_v45  ;;  %v614_v50 = vsub.f32 %v1127_v48, %v1097_v41  ;;  %v602_v51 = vpop.f32.mrb[5].mxu1 }
 0x1d8   :  { %v624_v52 = vadd.f32 %v954_v44, %v611_v47  ;;  %v613_v54 = vsub.f32 %v602_v51, %v426_v42 }
 0x1d9   :  { %v616_v55 = vsub.f32 %v614_v50, %v1112_v43  ;;  %vm640_vm2 = vcmp.lt.f32.partialorder %v625_v49, -0.01  ;;  %v957_v62 = vadd.f32 -0.01, %v625_v49  ;;  %v642_v63 = vadd.f32 0.01, %v625_v49 }
 0x1da   :  { %v615_v58 = vsub.f32 %v613_v54, %v513_v46  ;;  %v956_v59 = vadd.f32 -0.01, %v624_v52  ;;  %vm639_vm1 = vcmp.lt.f32.partialorder %v624_v52, -0.01  ;;  %v641_v61 = vadd.f32 0.01, %v624_v52 }
 0x1db   :  { %v634_v60 = vadd.f32 %v955_v53, %v616_v55  ;;  %vm635_vm3 = vcmp.gt.f32.partialorder %v624_v52, 0.01  ;;  %v644_v2 = vsel %vm640_vm2, %v642_v63, 0.0  ;;  %vm636_vm4 = vcmp.gt.f32.partialorder %v625_v49, 0.01 }
 0x1dc   :  { %v633_v0 = vadd.f32 %v955_v53, %v615_v58  ;;  %v643_v1 = vsel %vm639_vm1, %v641_v61, 0.0  ;;  %v646_v9 = vsel %vm636_vm4, %v957_v62, %v644_v2 }
 0x1dd   :  { %v645_v6 = vsel %vm635_vm3, %v956_v59, %v643_v1  ;;  %v959_v8 = vadd.f32 -0.01, %v634_v60  ;;  %vm652_vm6 = vcmp.lt.f32.partialorder %v634_v60, -0.01  ;;  %v654_v11 = vadd.f32 0.01, %v634_v60 }
 0x1de   :  { %v958_v7 = vadd.f32 -0.01, %v633_v0  ;;  %1140 = vmatprep.mubr.msk.f32.mxu0 %vm62_vm0, %v645_v6  ;;  %vm651_vm5 = vcmp.lt.f32.partialorder %v633_v0, -0.01  ;;  %v653_v10 = vadd.f32 0.01, %v633_v0 }
 0x1df   :  { %1141 = vmatmul.mubr.msk.f32.vlgmr.msra.gmra.mrb[6].mxu0 %vm62_vm0, %v646_v9  ;;  %vm647_vm7 = vcmp.gt.f32.partialorder %v633_v0, 0.01  ;;  %vm648_vm8 = vcmp.gt.f32.partialorder %v634_v60, 0.01  ;;  %v656_v14 = vsel %vm652_vm6, %v654_v11, 0.0 }
 0x1e0   :  { %1272 = vmatpush3.bf16.msra.mxu0 %v1269_v37  ;;  %v655_v12 = vsel %vm651_vm5, %v653_v10, 0.0  ;;  %v658_v17 = vsel %vm648_vm8, %v959_v8, %v656_v14 }
 0x1e1   :  { %v657_v13 = vsel %vm647_vm7, %v958_v7, %v655_v12  ;;  %1274 = vmatprep.subr.bf16.mxu0 %v1273_v3  ;;  %v834_v18 = vadd.f32 %v658_v17, %v646_v9 }
 0x1e2   :  { %1155 = vmatprep.mubr.msk.f32.mxu1 %vm62_vm0, %v657_v13  ;;  %v833_v16 = vadd.f32 %v657_v13, %v645_v6 }
 0x1e3   :  { %1156 = vmatmul.mubr.msk.f32.vlgmr.msra.gmra.mrb[6].mxu1 %vm62_vm0, %v658_v17 }
 0x1e4   :  { %1276 = vmatpush3.bf16.msra.mxu0 %v1273_v3  ;;  %1170 = vmatprep.mubr.msk.f32.mxu0 %vm62_vm0, %v833_v16 }
 0x1e5   :  { %1278 = vmatprep.subr.bf16.mxu0 %v1277_v15 }
 0x1e8   :  { %1280 = vmatpush3.bf16.msra.mxu0 %v1277_v15 }
 0x1eb   :  { %1171 = vmatmul.mubr.msk.f32.vlgmr.msra.gmra.mrb[8].mxu0 %vm62_vm0, %v834_v18 }
 0x2b2   :  { %v1142_v19 = vpop.f32.mrb[6].mxu0 }
 0x2b3   :  { %v737_v20 = vpop.f32.mrb[7].mxu0 }
 0x2b6   :  { %v1157_v21 = vpop.f32.mrb[6].mxu1 }
 0x2b7   :  { %v923_v22 = vsub.f32 %v1142_v19, %v1157_v21  ;;  %v824_v23 = vpop.f32.mrb[7].mxu1 }
 0x2b8   :  { %v922_v24 = vsub.f32 %v737_v20, %v824_v23 }
 0x2b9   :  { %929 = vst.msk [vmem:[%s1601_s15 + $0x8] sm:$0xff] %vm62_vm0, %v923_v22 }
 0x2ba   :  { %928 = vst.msk [vmem:[%s1601_s15] sm:$0xff] %vm62_vm0, %v922_v24 }
 0x2be   :  { %v1172_v25 = vpop.f32.mrb[8].mxu0 }
 0x2bf   :  { %v925_v26 = vsub.f32 %v1172_v25, %v1142_v19  ;;  %v913_v27 = vpop.f32.mrb[9].mxu0 }
 0x2c0   :  { %v924_v28 = vsub.f32 %v913_v27, %v737_v20 }
 0x2c1   :  { %v927_v29 = vsub.f32 %v925_v26, %v1157_v21 }
 0x2c2   :  { %v926_v30 = vsub.f32 %v924_v28, %v824_v23 }
 0x2c3   :  { %931 = vst.msk [vmem:[%s1602_s16 + $0x8] sm:$0xff] %vm62_vm0, %v927_v29 }
 0x2c4   :  { %930 = vst.msk [vmem:[%s1602_s16] sm:$0xff] %vm62_vm0, %v926_v30 }

</bundles_post_ra>
